<compile_context>
chip_gen: v5e
topology: v5e:2x2
jax: 0.10.0
libtpu: 0.0.40
codegen_flags: <defaults>
</compile_context>

<pallas_src>
import jax
import jax.numpy as jnp
from jax.experimental import pallas as pl
from jax.experimental.pallas import tpu as pltpu


# ----------------------------- Pallas kernel --------------------------------
def _downsample_gemm_kernel(p_ref, w_ref, o_ref):
    """Conv(3x3, stride 2, pad 1) as a single MXU GEMM.

    p_ref : (KP, MP) f32, VMEM.  im2col patches; row Cin*9 is all-ones (bias),
            remaining rows / columns are zero padding to tile-aligned shapes.
    w_ref : (Cout, KP) f32, VMEM.  Flattened conv weights; column Cin*9 is the
            bias, remaining columns are zero padding.
    o_ref : (Cout, MP) f32, VMEM.  Lane-dense output (MP is a multiple of 128),
            column m = n*OH*OW + r*OW + c.
    """
    o_ref[...] = jnp.dot(
        w_ref[...], p_ref[...], preferred_element_type=jnp.float32
    ).astype(o_ref.dtype)


# --------------------------- Downsample forward ------------------------------
def downsample_forward(x_nchw, weight, bias):
    """
    x_nchw : (N, Cin, H, W)         float32
    weight : (Cout, Cin, 3, 3)      float32   (PyTorch Conv2d layout)
    bias   : (Cout,)                float32
    returns: (N, Cout, OH, OW)      float32,  OH = (H-1)//2 + 1, OW = (W-1)//2 + 1
             (matches nn.Conv2d(k=3, s=2, p=1), including odd H/W)
    """
    N, Cin, H, W = x_nchw.shape
    Cout = weight.shape[0]
    OH = (H - 1) // 2 + 1
    OW = (W - 1) // 2 + 1
    M = N * OH * OW                      # 128 at the test size -> one lane width
    K = Cin * 9 + 1                      # +1 = all-ones row carrying the bias
    LANE = 128
    MP = pl.cdiv(M, LANE) * LANE         # lane-dense output width
    KP = pl.cdiv(K, LANE) * LANE         # MXU-tile-aligned contraction dim

    x = x_nchw.astype(jnp.float32)

    # conv padding=1: taps read x_pad[n, ci, 2r+kh, 2c+kw].
    xp = jnp.pad(x, ((0, 0), (0, 0), (1, 1), (1, 1)))

    # im2col (wrapper-side; ~18 KiB payload, fuses into 1-2 copies under jit).
    # Row order (ci, kh, kw) matches PyTorch's (Cout, Cin, 3, 3) weight layout;
    # column order is m = n*OH*OW + r*OW + c.
    taps = [
        xp[:, :, kh:kh + 2 * OH:2, kw:kw + 2 * OW:2]        # each (N, Cin, OH, OW)
        for kh in range(3) for kw in range(3)
    ]
    pat = jnp.stack(taps, axis=2)                            # (N, Cin, 9, OH, OW)
    pat = pat.transpose(1, 2, 0, 3, 4).reshape(Cin * 9, M)   # (Cin*9, M)
    pat = jnp.concatenate([pat, jnp.ones((1, M), jnp.float32)], axis=0)  # bias row
    pat = jnp.pad(pat, ((0, KP - K), (0, MP - M)))            # zero-pad to (KP, MP)

    # Weights (+ bias column) in VMEM as a (Cout, KP) matrix.
    w_mat = weight.astype(jnp.float32).reshape(Cout, Cin * 9)
    w_mat = jnp.concatenate(
        [w_mat, bias.astype(jnp.float32).reshape(Cout, 1)], axis=1
    )
    w_mat = jnp.pad(w_mat, ((0, 0), (0, KP - K)))             # (Cout, KP)

    out_mat = pl.pallas_call(
        _downsample_gemm_kernel,
        out_shape=jax.ShapeDtypeStruct((Cout, MP), jnp.float32),
        in_specs=[
            pl.BlockSpec(memory_space=pltpu.MemorySpace.VMEM),   # im2col patches
            pl.BlockSpec(memory_space=pltpu.MemorySpace.VMEM),   # weights + bias
        ],
        out_specs=pl.BlockSpec(memory_space=pltpu.MemorySpace.VMEM),
        cost_estimate=pl.CostEstimate(
            flops=2 * Cout * KP * MP,
            transcendentals=0,
            bytes_accessed=4 * (KP * MP + Cout * KP + Cout * MP),
        ),
    )(pat, w_mat)

    # One tiny reshape/transpose back to NCHW (lane-dense out_spec tradeoff).
    out = out_mat[:, :M].reshape(Cout, N, OH, OW).transpose(1, 0, 2, 3)
    return out


# ---------------------------------- main -------------------------------------
if __name__ == "__main__":
    key = jax.random.PRNGKey(0)
    k_x, k_w, k_b = jax.random.split(key, 3)

    N, C, H, W = 2, 4, 16, 16
    Cout = C  # out_channels defaults to channels

    # Deterministic inputs quantized to small integers / multiples of 1/8:
    # every product and partial sum of the conv is exactly representable in
    # both bf16 and f32, so the check below is independent of how the MXU
    # decomposes the f32 matmul (1/3/6-pass) and can stay tight.
    x = jax.random.randint(k_x, (N, C, H, W), -2, 3).astype(jnp.float32)
    weight = (jax.random.randint(k_w, (Cout, C, 3, 3), -2, 3) / 8.0).astype(jnp.float32)
    bias = (jax.random.randint(k_b, (Cout,), -2, 3) / 8.0).astype(jnp.float32)

    fwd = jax.jit(downsample_forward)
    y = jax.block_until_ready(fwd(x, weight, bias))

    # Reference check against XLA's conv (same semantics as nn.Conv2d).
    y_ref = jax.lax.conv_general_dilated(
        x, weight,
        window_strides=(2, 2),
        padding=((1, 1), (1, 1)),
        dimension_numbers=("NCHW", "OIHW", "NCHW"),
    ) + bias.reshape(1, Cout, 1, 1)

    assert y.shape == (N, Cout, H // 2, W // 2), y.shape
    assert jnp.allclose(y, y_ref, atol=1e-5, rtol=1e-5), float(
        jnp.max(jnp.abs(y - y_ref))
    )

    print("KERNEL_OK")
</pallas_src>

<mosaic_0001>
module attributes {stable_mosaic.version = 11 : i64} {
  func.func @_downsample_gemm_kernel(%arg0: memref<128x128xf32, #tpu.memory_space<vmem>>, %arg1: memref<4x128xf32, #tpu.memory_space<vmem>>, %arg2: memref<4x128xf32, #tpu.memory_space<vmem>>) attributes {dimension_semantics = [], scalar_prefetch = 0 : i64, scratch_operands = 0 : i64, tpu.core_type = #tpu.core_type<tc>} {
    %c0 = arith.constant 0 : index
    %c0_0 = arith.constant 0 : index
    %0 = vector.load %arg1[%c0, %c0_0] : memref<4x128xf32, #tpu.memory_space<vmem>>, vector<4x128xf32>
    %c0_1 = arith.constant 0 : index
    %c0_2 = arith.constant 0 : index
    %1 = vector.load %arg0[%c0_1, %c0_2] : memref<128x128xf32, #tpu.memory_space<vmem>>, vector<128x128xf32>
    %cst = arith.constant dense<0.000000e+00> : vector<4x128xf32>
    %2 = tpu.matmul %0, %1, %cst {dimension_numbers = #tpu.dot_dimension_numbers<[1], [0], [0], [1], [0, 0, 1, 1], [], []>} : vector<4x128xf32>, vector<128x128xf32>, vector<4x128xf32> -> vector<4x128xf32>
    %c0_3 = arith.constant 0 : index
    %c0_4 = arith.constant 0 : index
    %3 = vector.load %arg2[%c0_3, %c0_4] : memref<4x128xf32, #tpu.memory_space<vmem>>, vector<4x128xf32>
    tpu.vector_store %arg2[%c0_3, %c0_4], %2 {strides = array<i32>} : memref<4x128xf32, #tpu.memory_space<vmem>>, vector<4x128xf32>,
    return
  }
}

</mosaic_0001>

<bundles_post_ra>
// kernel: downsample_forward.1
= control target key start
LH: loop header
LB: loop body
LE: loop exit
PB: predicated region body
PF: predicated region fallthrough
CT: control target
= control target key end

     0   :  { %s122_s0 = inlined_call_operand.vmem [shape: f32[128,128], index: 0, kind: input, shape index: {}]   ;;  %s123_s1 = inlined_call_operand.vmem [shape: f32[4,128], index: 1, kind: input, shape index: {}]   ;;  %s124_s2 = inlined_call_operand.vmem [shape: f32[4,128], index: 2, kind: output, shape index: {}]  }
   0x1   :  { %v27_v0 = vld [vmem:[%s122_s0 + $0x78] sm:$0xff]  ;;  %v26_v1 = vld [vmem:[%s122_s0 + $0x70] sm:$0xff]  ;;  %v25_v2 = vld [vmem:[%s122_s0 + $0x68] sm:$0xff] }
   0x2   :  { %28 = vmatpush.msra.mxu0 %v27_v0  ;;  %v24_v3 = vld [vmem:[%s122_s0 + $0x60] sm:$0xff]  ;;  %v23_v4 = vld [vmem:[%s122_s0 + $0x58] sm:$0xff]  ;;  %v22_v5 = vld [vmem:[%s122_s0 + $0x50] sm:$0xff] }
   0x3   :  { %v21_v6 = vld [vmem:[%s122_s0 + $0x48] sm:$0xff]  ;;  %v20_v7 = vld [vmem:[%s122_s0 + $0x40] sm:$0xff]  ;;  %v19_v8 = vld [vmem:[%s122_s0 + $0x38] sm:$0xff] }
   0x4   :  { %29 = vmatpush.msra.mxu0 %v26_v1  ;;  %v18_v9 = vld [vmem:[%s122_s0 + $0x30] sm:$0xff]  ;;  %v17_v10 = vld [vmem:[%s122_s0 + $0x28] sm:$0xff]  ;;  %v16_v11 = vld [vmem:[%s122_s0 + $0x20] sm:$0xff] }
   0x5   :  { %v15_v12 = vld [vmem:[%s122_s0 + $0x18] sm:$0xff]  ;;  %v14_v13 = vld [vmem:[%s122_s0 + $0x10] sm:$0xff]  ;;  %v13_v14 = vld [vmem:[%s122_s0 + $0x8] sm:$0xff] }
   0x6   :  { %30 = vmatpush.msra.mxu0 %v25_v2  ;;  %v12_v15 = vld [vmem:[%s122_s0] sm:$0xff] }
   0x7   :  { %v11_v16 = vld [vmem:[%s123_s1] sm:$0xf] }
   0x8   :  { %31 = vmatpush.msra.mxu0 %v24_v3 }
   0xa   :  { %32 = vmatpush.msra.mxu0 %v23_v4 }
   0xc   :  { %33 = vmatpush.msra.mxu0 %v22_v5 }
   0xe   :  { %34 = vmatpush.msra.mxu0 %v21_v6 }
  0x10   :  { %35 = vmatpush.msra.mxu0 %v20_v7 }
  0x12   :  { %36 = vmatpush.msra.mxu0 %v19_v8 }
  0x14   :  { %37 = vmatpush.msra.mxu0 %v18_v9 }
  0x16   :  { %38 = vmatpush.msra.mxu0 %v17_v10 }
  0x18   :  { %39 = vmatpush.msra.mxu0 %v16_v11 }
  0x1a   :  { %40 = vmatpush.msra.mxu0 %v15_v12 }
  0x1c   :  { %41 = vmatpush.msra.mxu0 %v14_v13 }
  0x1e   :  { %42 = vmatpush.msra.mxu0 %v13_v14 }
  0x20   :  { %43 = vmatpush.msra.mxu0 %v12_v15 }
  0x21   :  { %44 = vmatmul.f32.vlgmr.msra.gmra.mxu0 %v11_v16 }
  0x9e   :  { %v45_v17 = vpop.f32.mrf.mxu0 }
  0x9f   :  { %48 = vst [vmem:[%s124_s2] sm:$0xf] %v45_v17 }

</bundles_post_ra>
